<compile_context>
chip_gen: v6e
topology: v6e:2x2x1
jax: 0.10.0
libtpu: 0.0.40
codegen_flags: <defaults>
</compile_context>

<pallas_src>
import functools

import jax
import jax.numpy as jnp
from jax.experimental import pallas as pl
from jax.experimental.pallas import tpu as pltpu


def msa_kernel(x_ref, wqkv_ref, bqkv_ref, o_ref, *, num_heads):
    BB, N, H = x_ref.shape                                         # batch block, tokens, hidden
    nh = num_heads
    d = H // nh

    # Fused, batched QKV projection: one wide MXU matmul over all BB*N rows.
    # The 1/sqrt(d) attention scale is already folded into the Q columns of wqkv.
    x2 = x_ref[...].reshape(BB * N, H)
    qkv = jnp.dot(x2, wqkv_ref[...],
                  preferred_element_type=jnp.float32) + bqkv_ref[...]   # (BB*N, 3H)

    q = qkv[:, :H]
    k = qkv[:, H:2 * H]
    v = qkv[:, 2 * H:]

    # Head split via reshape + single transpose (no per-head lane slices), then merge
    # (BB, heads) into one leading batch axis for the two contractions.
    def to_heads(t):
        return t.reshape(BB, N, nh, d).transpose(0, 2, 1, 3).reshape(BB * nh, N, d)

    qh = to_heads(q)                                               # (BB*nh, N, d)
    kh = to_heads(k)
    vh = to_heads(v)

    # Scores: S[g, q, k] = q_g . k_g  (scale pre-folded), g = batch*head.
    S = jnp.einsum('gqd,gkd->gqk', qh, kh,
                   preferred_element_type=jnp.float32)             # (BB*nh, N, N)
    S = S.reshape(BB, nh, N, N)

    # Softmax over the HEAD axis (dim=1 of (b,h,q,k)), as in the reference module.
    m = jnp.max(S, axis=1, keepdims=True)
    e = jnp.exp(S - m)
    denom = jnp.sum(e, axis=1, keepdims=True)
    A = e * pl.reciprocal(denom, approx=True)                      # EUP reciprocal

    # Weighted values: out_g = A_g @ v_g, then heads back into the hidden dim.
    out = jnp.einsum('gqk,gkd->gqd', A.reshape(BB * nh, N, N), vh,
                     preferred_element_type=jnp.float32)           # (BB*nh, N, d)
    out = out.reshape(BB, nh, N, d).transpose(0, 2, 1, 3).reshape(BB, N, H)
    o_ref[...] = out.astype(o_ref.dtype)


def _pick_batch_block(B, N):
    # Batch enough sequences per grid step that the fused QKV matmul has ~128+
    # rows on the MXU, but keep >=2 grid steps when B allows so both of v7x's
    # TensorCores get work on the "parallel" grid axis.
    bb = min(B, max(1, 128 // max(N, 1)))
    if bb >= B and B > 1:
        bb = max(1, B // 2)
    while B % bb != 0:
        bb -= 1
    return bb


def msa_forward(x, wq, bq, wk, bk, wv, bv, *, num_heads, batch_block=None):
    B, N, H = x.shape
    assert H % num_heads == 0
    scale = 1.0 / ((H / num_heads) ** 0.5)                         # 1 / D_h

    # Fold the attention scale into the Q projection and fuse Q/K/V into one
    # (H, 3H) weight / (1, 3H) bias -> a single wide matmul and one resident DMA.
    wqkv = jnp.concatenate([wq * scale, wk, wv], axis=1)           # (H, 3H)
    bqkv = jnp.concatenate([bq * scale, bk, bv], axis=0).reshape(1, 3 * H)

    BB = _pick_batch_block(B, N) if batch_block is None else batch_block
    assert B % BB == 0
    num_blocks = B // BB

    # VMEM budget: double-buffered x/out blocks + resident weight + f32 intermediates
    # (qkv, S/e/A). Clamp to [32 MiB, 64 MiB] so it is safe on v5e/v6e/v7x.
    isz = 4
    x_blk = BB * N * H * isz
    w_blk = H * 3 * H * isz + 3 * H * isz
    qkv_blk = BB * N * 3 * H * isz
    s_blk = BB * num_heads * N * N * isz
    est = 2 * (2 * x_blk + w_blk) + qkv_blk + 4 * s_blk + (4 << 20)
    vmem_limit = int(min(max(est, 32 << 20), 64 << 20))

    kernel = functools.partial(msa_kernel, num_heads=num_heads)

    return pl.pallas_call(
        kernel,
        out_shape=jax.ShapeDtypeStruct((B, N, H), x.dtype),
        grid_spec=pltpu.PrefetchScalarGridSpec(
            num_scalar_prefetch=0,
            grid=(num_blocks,),
            in_specs=[
                pl.BlockSpec((BB, N, H), lambda b: (b, 0, 0)),     # x, one batch block
                pl.BlockSpec((H, 3 * H), lambda b: (0, 0)),        # fused Wqkv (VMEM-resident)
                pl.BlockSpec((1, 3 * H), lambda b: (0, 0)),        # fused bqkv (VMEM-resident)
            ],
            out_specs=pl.BlockSpec((BB, N, H), lambda b: (b, 0, 0)),
        ),
        compiler_params=pltpu.CompilerParams(
            dimension_semantics=("parallel",),
            vmem_limit_bytes=vmem_limit,
        ),
    )(x, wqkv, bqkv)


def msa_reference(x, wq, bq, wk, bk, wv, bv, num_heads):
    # Pure-JAX re-statement of the PyTorch forward (including softmax over the head axis).
    B, N, H = x.shape
    d = H // num_heads
    D_h = (H / num_heads) ** 0.5
    q = (x @ wq + bq).reshape(B, N, num_heads, d).transpose(0, 2, 1, 3)
    k = (x @ wk + bk).reshape(B, N, num_heads, d).transpose(0, 2, 1, 3)
    v = (x @ wv + bv).reshape(B, N, num_heads, d).transpose(0, 2, 1, 3)
    A = jnp.einsum('bhqd,bhkd->bhqk', q, k) / D_h
    A = jax.nn.softmax(A, axis=1)                                  # head axis, like nn.Softmax(dim=1)
    Ax = jnp.einsum('bhqk,bhkd->bhqd', A, v)
    return Ax.transpose(0, 2, 1, 3).reshape(B, N, H)


if __name__ == "__main__":
    B, N = 2, 8
    num_heads = 6
    H = 48                                                         # hidden_dim, divisible by num_heads

    key = jax.random.PRNGKey(0)
    kx, kq, kk, kv, kbq, kbk, kbv = jax.random.split(key, 7)
    x = jax.random.normal(kx, (B, N, H), dtype=jnp.float32)
    wq = jax.random.normal(kq, (H, H), dtype=jnp.float32) * 0.05
    wk = jax.random.normal(kk, (H, H), dtype=jnp.float32) * 0.05
    wv = jax.random.normal(kv, (H, H), dtype=jnp.float32) * 0.05
    bq = jax.random.normal(kbq, (H,), dtype=jnp.float32) * 0.05
    bk = jax.random.normal(kbk, (H,), dtype=jnp.float32) * 0.05
    bv = jax.random.normal(kbv, (H,), dtype=jnp.float32) * 0.05

    out = msa_forward(x, wq, bq, wk, bk, wv, bv, num_heads=num_heads)
    out = jax.block_until_ready(out)

    ref = msa_reference(x, wq, bq, wk, bk, wv, bv, num_heads)
    assert out.shape == (B, N, H)
    # Tolerance relaxed vs. 1e-4 because of the approximate EUP reciprocal in softmax.
    assert jnp.allclose(out, ref, atol=2e-3, rtol=2e-3), "mismatch vs reference"
    print("KERNEL_OK")
</pallas_src>

<mosaic_0001>
module attributes {stable_mosaic.version = 11 : i64} {
  func.func @msa_kernel(%arg0: i32, %arg1: memref<1x8x48xf32, #tpu.memory_space<vmem>>, %arg2: memref<48x144xf32, #tpu.memory_space<vmem>>, %arg3: memref<1x144xf32, #tpu.memory_space<vmem>>, %arg4: memref<1x8x48xf32, #tpu.memory_space<vmem>>) attributes {dimension_semantics = [#tpu.dimension_semantics<parallel>], iteration_bounds = array<i64: 2>, scalar_prefetch = 0 : i64, scratch_operands = 0 : i64, tpu.core_type = #tpu.core_type<tc>, window_params = [{transform_indices = @transform_0, window_bounds = array<i64: 1, 8, 48>}, {pipeline_mode = #tpu.pipeline_mode<synchronous>, transform_indices = @transform_1, window_bounds = array<i64: 48, 144>}, {pipeline_mode = #tpu.pipeline_mode<synchronous>, transform_indices = @transform_2, window_bounds = array<i64: 1, 144>}, {transform_indices = @transform_3, window_bounds = array<i64: 1, 8, 48>}]} {
    %c0 = arith.constant 0 : index
    %c0_0 = arith.constant 0 : index
    %c0_1 = arith.constant 0 : index
    %0 = vector.load %arg1[%c0, %c0_0, %c0_1] : memref<1x8x48xf32, #tpu.memory_space<vmem>>, vector<1x8x48xf32>
    %1 = vector.shape_cast %0 : vector<1x8x48xf32> to vector<8x48xf32>
    %c0_2 = arith.constant 0 : index
    %c0_3 = arith.constant 0 : index
    %2 = vector.load %arg2[%c0_2, %c0_3] : memref<48x144xf32, #tpu.memory_space<vmem>>, vector<48x144xf32>
    %cst = arith.constant dense<0.000000e+00> : vector<8x144xf32>
    %3 = tpu.matmul %1, %2, %cst {dimension_numbers = #tpu.dot_dimension_numbers<[1], [0], [0], [1], [0, 0, 1, 1], [], []>} : vector<8x48xf32>, vector<48x144xf32>, vector<8x144xf32> -> vector<8x144xf32>
    %c0_4 = arith.constant 0 : index
    %c0_5 = arith.constant 0 : index
    %4 = vector.load %arg3[%c0_4, %c0_5] : memref<1x144xf32, #tpu.memory_space<vmem>>, vector<1x144xf32>
    %5 = vector.broadcast %4 : vector<1x144xf32> to vector<8x144xf32>
    %6 = arith.addf %3, %5 : vector<8x144xf32>
    %7 = vector.extract_strided_slice %6 {offsets = [0, 0], sizes = [8, 48], strides = [1, 1]} : vector<8x144xf32> to vector<8x48xf32>
    %8 = vector.extract_strided_slice %6 {offsets = [0, 48], sizes = [8, 48], strides = [1, 1]} : vector<8x144xf32> to vector<8x48xf32>
    %9 = vector.extract_strided_slice %6 {offsets = [0, 96], sizes = [8, 48], strides = [1, 1]} : vector<8x144xf32> to vector<8x48xf32>
    %10 = vector.shape_cast %7 : vector<8x48xf32> to vector<1x8x6x8xf32>
    %11 = tpu.transpose %10, [0, 2, 1, 3] : vector<1x8x6x8xf32> -> vector<1x6x8x8xf32>
    %12 = vector.shape_cast %11 : vector<1x6x8x8xf32> to vector<6x8x8xf32>
    %13 = vector.shape_cast %8 : vector<8x48xf32> to vector<1x8x6x8xf32>
    %14 = tpu.transpose %13, [0, 2, 1, 3] : vector<1x8x6x8xf32> -> vector<1x6x8x8xf32>
    %15 = vector.shape_cast %14 : vector<1x6x8x8xf32> to vector<6x8x8xf32>
    %16 = vector.shape_cast %9 : vector<8x48xf32> to vector<1x8x6x8xf32>
    %17 = tpu.transpose %16, [0, 2, 1, 3] : vector<1x8x6x8xf32> -> vector<1x6x8x8xf32>
    %18 = vector.shape_cast %17 : vector<1x6x8x8xf32> to vector<6x8x8xf32>
    "tpu.trace_start"() <{level = 10 : i32, message = "gqd,gkd->gqk"}> : () -> ()
    %cst_6 = arith.constant dense<0.000000e+00> : vector<6x8x8xf32>
    %19 = tpu.matmul %12, %15, %cst_6 {dimension_numbers = #tpu.dot_dimension_numbers<[2], [2], [1], [1], [0, 0, 0, 1, 1, 1], [0], [0]>} : vector<6x8x8xf32>, vector<6x8x8xf32>, vector<6x8x8xf32> -> vector<6x8x8xf32>
    "tpu.trace_stop"() : () -> ()
    %20 = vector.shape_cast %19 : vector<6x8x8xf32> to vector<1x6x8x8xf32>
    %cst_7 = arith.constant dense<0xFF800000> : vector<1x8x8xf32>
    %21 = vector.multi_reduction <maximumf>, %20, %cst_7 [1] : vector<1x6x8x8xf32> to vector<1x8x8xf32>
    %22 = vector.shape_cast %21 : vector<1x8x8xf32> to vector<1x1x8x8xf32>
    %23 = vector.broadcast %22 : vector<1x1x8x8xf32> to vector<1x6x8x8xf32>
    %24 = arith.subf %20, %23 : vector<1x6x8x8xf32>
    %25 = math.exp %24 : vector<1x6x8x8xf32>
    %cst_8 = arith.constant dense<0.000000e+00> : vector<1x8x8xf32>
    %26 = vector.multi_reduction <add>, %25, %cst_8 [1] : vector<1x6x8x8xf32> to vector<1x8x8xf32>
    %27 = vector.shape_cast %26 : vector<1x8x8xf32> to vector<1x1x8x8xf32>
    %28 = tpu.reciprocal %27 {approx = true} : vector<1x1x8x8xf32> -> vector<1x1x8x8xf32>
    %29 = vector.broadcast %28 : vector<1x1x8x8xf32> to vector<1x6x8x8xf32>
    %30 = arith.mulf %25, %29 : vector<1x6x8x8xf32>
    %31 = vector.shape_cast %30 : vector<1x6x8x8xf32> to vector<6x8x8xf32>
    "tpu.trace_start"() <{level = 10 : i32, message = "gqk,gkd->gqd"}> : () -> ()
    %cst_9 = arith.constant dense<0.000000e+00> : vector<6x8x8xf32>
    %32 = tpu.matmul %31, %18, %cst_9 {dimension_numbers = #tpu.dot_dimension_numbers<[2], [1], [1], [2], [0, 0, 0, 1, 1, 2], [0], [0]>} : vector<6x8x8xf32>, vector<6x8x8xf32>, vector<6x8x8xf32> -> vector<6x8x8xf32>
    "tpu.trace_stop"() : () -> ()
    %33 = vector.shape_cast %32 : vector<6x8x8xf32> to vector<1x6x8x8xf32>
    %34 = tpu.transpose %33, [0, 2, 1, 3] : vector<1x6x8x8xf32> -> vector<1x8x6x8xf32>
    %35 = vector.shape_cast %34 : vector<1x8x6x8xf32> to vector<1x8x48xf32>
    %c0_10 = arith.constant 0 : index
    %c0_11 = arith.constant 0 : index
    %c0_12 = arith.constant 0 : index
    %36 = vector.load %arg4[%c0_10, %c0_11, %c0_12] : memref<1x8x48xf32, #tpu.memory_space<vmem>>, vector<1x8x48xf32>
    tpu.vector_store %arg4[%c0_10, %c0_11, %c0_12], %35 {strides = array<i32>} : memref<1x8x48xf32, #tpu.memory_space<vmem>>, vector<1x8x48xf32>,
    return
  }
  func.func @transform_0(%arg0: i32) -> (i32, i32, i32) {
    %c0_i32 = arith.constant 0 : i32
    %c0_i32_0 = arith.constant 0 : i32
    %c0_i32_1 = arith.constant 0 : i32
    return %arg0, %c0_i32, %c0_i32_0 : i32, i32, i32
  }
  func.func @transform_1(%arg0: i32) -> (i32, i32) {
    %c0_i32 = arith.constant 0 : i32
    %c0_i32_0 = arith.constant 0 : i32
    %c0_i32_1 = arith.constant 0 : i32
    return %c0_i32, %c0_i32_0 : i32, i32
  }
  func.func @transform_2(%arg0: i32) -> (i32, i32) {
    %c0_i32 = arith.constant 0 : i32
    %c0_i32_0 = arith.constant 0 : i32
    %c0_i32_1 = arith.constant 0 : i32
    return %c0_i32, %c0_i32_0 : i32, i32
  }
  func.func @transform_3(%arg0: i32) -> (i32, i32, i32) {
    %c0_i32 = arith.constant 0 : i32
    %c0_i32_0 = arith.constant 0 : i32
    %c0_i32_1 = arith.constant 0 : i32
    return %arg0, %c0_i32, %c0_i32_0 : i32, i32, i32
  }
}

</mosaic_0001>

<bundles_post_ra>
// kernel: tpu_custom_call.1
= control target key start
LH: loop header
LB: loop body
LE: loop exit
PB: predicated region body
PF: predicated region fallthrough
CT: control target
= control target key end

     0   :  { %8 = vsyncpa [#allocation3], 0  ;;  %s3284_s0 = inlined_call_operand.hbm [shape: f32[2,8,48], index: 0, kind: input, shape index: {}]   ;;  %s3285_s1 = inlined_call_operand.hbm [shape: f32[48,144], index: 1, kind: input, shape index: {}]   ;;  %s3286_s2 = inlined_call_operand.vmem [shape: f32[1,144], index: 2, kind: input, shape index: {}]   ;;  %s3287_s3 = inlined_call_operand.hbm [shape: f32[2,8,48], index: 3, kind: output, shape index: {}]  }
   0x1   :  { %10 = vsyncpa [#allocation3 + $0x1], 0 }
   0x2   :  { %11 = vsyncpa [#allocation6], 0 }
   0x3   :  { %12 = vsyncpa [#allocation4], 0 }
   0x4   :  { %14 = vsyncpa [#allocation4 + $0x1], 0  ;;  %s2833_s12 = smov 0   ;;  %s2835_s13 = smov 0  }
   0x5   :  { %s2837_s14 = smov 0   ;;  %s2839_s15 = smov 0  }
   0x6 LB: > { %s2854_s16 = sadd.s32 4294967295, %s2791_s15   ;;  %s2432_s17 = sadd.s32 4294967294, %s2791_s15   ;;  %s2791_s15 = sphi %s2839_s15, %s3309_s15   ;;  %s2787_s14 = sphi %s2837_s14, %s3308_s14   ;;  %s2783_s13 = sphi %s2835_s13, %s3307_s13   ;;  %s2779_s12 = sphi %s2833_s12, %s3306_s12  }
   0x7   : > { %p40_p0 = scmp.ne.s32.totalorder %s2783_s13, %s2779_s12  ;;  %p3288_p1 = scmp.eq.s32.totalorder %s2854_s16, 0 }
   0x8   : > { %p112_p3 = scmp.eq.s32.totalorder %s2432_s17, 1  ;;  %p2433_p5 = scmp.ge.s32.totalorder %s2791_s15, 1 }
   0x9   : > { %p2863_p4 = por %p3288_p1, %p40_p0  ;;  %p119_p7 = scmp.lt.s32.totalorder %s2791_s15, 3 }
   0xa   : > { %p2868_p6 = por %p112_p3, %p40_p0  ;;  %s2793_s21 = smov [#allocation5]  }
   0xb   : > { %s3292_s18 = scalar_select %p2863_p4, 1, 0 }
   0xc   : > { %s3293_s19 = scalar_select %p2868_p6, 1, 0 }
   0xd   : > { %p2873_p8 = pnand %p2433_p5, %p119_p7  ;;  %s131_s22 = sshll.u32 %s2793_s21, 4  ;;  %s132_s22 = int_to_ptr.vmem [resolvable:$true] %s131_s22 }
   0xe   : > { %s2887_s24 = sadd.s32 1, %s2791_s15   ;;  %s27_s25 = sadd.s32 1, %s2787_s14 }
   0xf   : > { %s3294_s20 = scalar_select %p2873_p8, 1, 0 }
  0x10   : > { %p2589_p9 = pneg %p2873_p8  ;;  %s24_s26 = ssub.s32 %s2791_s15, %s2887_s24 }
  0x11   : > { %s2680_s27 = scalar_lea.vmem %s132_s22, 1536  ;;  %p2688_p5 = scmp.lt.s32.totalorder %s132_s22, %s132_s22 }
  0x12   : > { %p2882_p11 = pnand %p2589_p9, %p3288_p1  ;;  %p2681_p13 = scmp.ne.s32.totalorder %s132_s22, %s2680_s27 }
  0x13   : > { %p2689_p7 = scmp.lt.s32.totalorder %s2680_s27, %s2680_s27 }
  0x14   : > { %p2671_p12 = pneg %p2882_p11 }
  0x15   : > { %p2690_p10 = por %p2689_p7, %p2688_p5 }
  0x16   : > { %p2683_p0 = pnand %p2681_p13, %p2671_p12 }
  0x18   : > { %p2684_p3 = pneg %p2683_p0 }
  0x1a   : > { %p2691_p2 = pnand %p2690_p10, %p2684_p3 }
  0x1c   : > { %2694 = shalt.err (!%p2691_p2)
}
  0x1d   : > { %s2794_s28 = smov 256   ;;  %s2795_s29 = smov 16  }
  0x1e   : > { %2592 = dma.hbm_to_vmem [thread:$0]  (!%p2882_p11), %s3285_s1, 1536, %s132_s22, [#allocation6], %s2794_s28, %s2794_s28, %s2795_s29  }
  0x1f   : > { %p25_p9 = scmp.eq.s32.totalorder %s24_s26, 0  ;;  %p34_p12 = scmp.ne.s32.totalorder %s2787_s14, %s2783_s13 }
  0x20   : > { %p35_p10 = scmp.eq.s32.totalorder %s2791_s15, 0  ;;  %p2602_p2 = scmp.lt.s32.totalorder %s2791_s15, 2 }
  0x21   : > { %s2904_s5 = scalar_select %p25_p9, %s2787_s14, %s27_s25  }
  0x22   : > { %p36_p13 = por %p35_p10, %p34_p12  ;;  %p3296_p0 = scmp.eq.s32.totalorder %s2854_s16, 1 }
  0x23   : > { %s148_s7 = sand.u32 1, %s2787_s14   ;;  %s2437_s8 = sshll.u32 %s2791_s15, 7 }
  0x24   : > { %p2908_p3 = por %p3296_p0, %p34_p12  ;;  %s2436_s9 = sshll.u32 %s148_s7, 3 }
  0x25   : > { %s2917_s17 = scalar_lea.hbm %s3284_s0, %s2437_s8  ;;  %s152_s21 = scalar_lea.vmem [#allocation2], %s2436_s9 }
  0x26   : > { %s3297_s6 = scalar_select %p2908_p3, 1, 0 }
  0x27   : > { %s159_s22 = sshll.u32 %s152_s21, 4  ;;  %p2919_p11 = pnand %p2602_p2, %p36_p13  ;;  %s160_s22 = int_to_ptr.vmem [resolvable:$true] %s159_s22 }
  0x28   : > { %s149_s25 = scalar_lea.sflag [#allocation3], %s148_s7  ;;  %s2695_s26 = scalar_lea.hbm %s2917_s17, 128 }
  0x29   : > { %p2696_p5 = scmp.ne.s32.totalorder %s2917_s17, %s2695_s26  ;;  %p2697_p7 = pneg %p2919_p11 }
  0x2a   : > { %s2700_s29 = scalar_lea.hbm %s3284_s0, 256  ;;  %p2701_p10 = scmp.lt.s32.totalorder %s2917_s17, %s3284_s0 }
  0x2b   : > { %p2698_p9 = pnand %p2697_p7, %p2696_p5  ;;  %p2702_p2 = scmp.lt.s32.totalorder %s2700_s29, %s2695_s26 }
  0x2d   : > { %p2699_p12 = pneg %p2698_p9  ;;  %p2703_p13 = por %p2702_p2, %p2701_p10 }
  0x2f   : > { %p2704_p0 = pnand %p2703_p13, %p2699_p12 }
  0x31   : > { %2707 = shalt.err (!%p2704_p0)
}
  0x32   : > { %s2708_s8 = scalar_lea.vmem %s160_s22, 128  ;;  %s2796_s7 = smov [#allocation2]  }
  0x33   : > { %p2709_p1 = scmp.ne.s32.totalorder %s160_s22, %s2708_s8  ;;  %s2713_s9 = sshll.u32 %s2796_s7, 4  ;;  %s2714_s9 = int_to_ptr.vmem [resolvable:$false] %s2713_s9 }
  0x34   : > { %s2715_s10 = scalar_lea.vmem %s2714_s9, 256  ;;  %p2716_p5 = scmp.lt.s32.totalorder %s160_s22, %s2714_s9 }
  0x35   : > { %p2711_p6 = pnand %p2709_p1, %p2697_p7  ;;  %p2717_p9 = scmp.lt.s32.totalorder %s2715_s10, %s2708_s8 }
  0x37   : > { %p2712_p3 = pneg %p2711_p6  ;;  %p2718_p4 = por %p2717_p9, %p2716_p5 }
  0x39   : > { %p2719_p8 = pnand %p2718_p4, %p2712_p3 }
  0x3b   : > { %2722 = shalt.err (!%p2719_p8)
}
  0x3c   : > { %2596 = dma.hbm_to_vmem [thread:$0]  (!%p2919_p11), %s2917_s17, 128, %s160_s22, %s149_s25  }
  0x3d   : > { %p3299_p12 = scmp.ne.s32.totalorder %s3294_s20, 0 }
  0x3e   : > { %s2940_s11 = sand.u32 (!%p3299_p12), 1, %s2783_s13   ;;  %p3300_p1 = scmp.ne.s32.totalorder (!%p3299_p12), %s3292_s18, 0 }
  0x3f   : > { %168 = sbr.rel (%p3299_p12) target bundleno = 1148 (0x47c), region = 32  ;;  %s2439_s21 = sshll.u32 (!%p3299_p12), %s2940_s11, 3 }
  0x40   : > { %s171_s26 = scalar_lea.sflag (!%p3299_p12), [#allocation3], %s2940_s11  ;;  %s174_s27 = scalar_lea.vmem (!%p3299_p12), [#allocation2], %s2439_s21 }
  0x44   : > { %2766 = dma.done.wait (%p3300_p1), %s171_s26, 128  }
  0x45   : > { %2768 = vsyncadd (%p3300_p1), %s171_s26, 4294967168  ;;  %p3301_p4 = scmp.eq.s32.totalorder %s2854_s16, 0 }
  0x47   : > { %2770 = dma.done.wait (%p3301_p4), [#allocation6], 1536   ;;  %p3302_p6 = pmov %p3301_p4 }
  0x48   : > { %v2797_v0 = vmov 0.0   ;;  %v213_v1 = vld [vmem:[#allocation5 + $0x58] sm:$0xff]  ;;  %v212_v2 = vld [vmem:[#allocation5 + $0x50] sm:$0xff]  ;;  %v211_v3 = vld [vmem:[#allocation5 + $0x48] sm:$0xff]  ;;  %vm226_vm0 = vcmask 392192   ;;  %v216_v14 = vlaneseq  ;;  %s2798_s17 = smov 104  }
  0x49   : > { %2772 = vsyncadd (%p3302_p6), [#allocation6], 4294965760  ;;  %294 = vmatprep.mubr.f32.mxu0 %v2797_v0  ;;  %2521 = vmatprep.subr.mxu1 %v2797_v0  ;;  %v210_v4 = vld [vmem:[#allocation5 + $0x40] sm:$0xff]  ;;  %v209_v5 = vld [vmem:[#allocation5 + $0x38] sm:$0xff]  ;;  %s2799_s22 = smov 120   ;;  %s2800_s23 = smov 96  }
  0x4a   : > { %250 = vmatprep.subr.mxu0 %v213_v1  ;;  %v208_v6 = vld [vmem:[#allocation5 + $0x30] sm:$0xff]  ;;  %v207_v7 = vld [vmem:[#allocation5 + $0x28] sm:$0xff]  ;;  %v206_v8 = vld [vmem:[#allocation5 + $0x20] sm:$0xff]  ;;  %v217_v15 = vshrl.u32 %v216_v14, 7  ;;  %s2801_s25 = smov 112   ;;  %s2802_s28 = smov 80  }
  0x4b   : > { %251 = vmatpush1.msra.mxu0 %v212_v2  ;;  %v205_v9 = vld [vmem:[#allocation5 + $0x18] sm:$0xff]  ;;  %v204_v10 = vld [vmem:[#allocation5 + $0x10] sm:$0xff]  ;;  %v203_v11 = vld [vmem:[#allocation5 + $0x8] sm:$0xff]  ;;  %s2803_s29 = smov 88   ;;  %v2804_v21 = vmov 1983009808  }
  0x4c   : > { %252 = vmatprep.subr.mxu0 %v211_v3  ;;  %v202_v12 = vld [vmem:[#allocation5] sm:$0xff]  ;;  %v201_v13 = vld [vmem:[%s174_s27] sm:$0xff]  ;;  %v218_v16 = vsub.s32 0, %v217_v15  ;;  %v320_v22 = vunpack.c.l.s4 %v2804_v21  ;;  %v2805_v23 = vmov 1934713408   ;;  %v222_v31 = vsub.s32 1, %v217_v15 }
  0x4d   : > { %253 = vmatpush1.msra.mxu0 %v210_v4  ;;  %v214_v17 = vld [vmem:[%s3286_s2] sm:$0x3]  ;;  %v382_v24 = vunpack.c.l.s4 %v2805_v23  ;;  %vm2806_vm1 = vmmov 0   ;;  %s2807_s30 = smov 32   ;;  %vm1114_vm2 = vcmask 64512   ;;  %s2808_s4 = smov 16  }
  0x4e   : > { %254 = vmatprep.subr.mxu0 %v209_v5  ;;  %v219_v18 = vrot.slane %v214_v17, %v218_v16  ;;  %v321_v25 = vunpack.c.0.s8 %v320_v22  ;;  %v223_v37 = vrot.slane %v214_v17, %v222_v31  ;;  %2523 = vmatprep.mubr.msk.f32.mxu1 %vm2806_vm1, %v2797_v0  ;;  %s2809_s8 = smov 8   ;;  %s2810_s7 = smov 24   ;;  %vm2329_vm3 = vcmask 130048  }
  0x4f   : > { %255 = vmatpush1.msra.mxu0 %v208_v6  ;;  %v383_v30 = vunpack.c.0.s8 %v382_v24  ;;  %s2811_s9 = smov 40   ;;  %vm2331_vm4 = vcmask 195584   ;;  %vm2333_vm5 = vcmask 261120   ;;  %s2494_s10 = sshll.u32 %s2854_s16, 7  ;;  %vm2335_vm6 = vcmask 326656  }
  0x50   : > { %256 = vmatprep.subr.mxu0 %v207_v7  ;;  %v2973_v32 = vsub.s32 %v321_v25, %v217_v15  ;;  %s200_s26 = scalar_lea.vmem [#allocation7], %s2439_s21  ;;  %p3303_p3 = scmp.ne.s32.totalorder %s3297_s6, 0 }
  0x51   : > { %257 = vmatpush1.msra.mxu0 %v206_v8  ;;  %v2978_v36 = vsub.s32 %v383_v30, %v217_v15  ;;  %s2352_s27 = sshll.u32 %s200_s26, 4  ;;  %s2812_s16 = smov [#allocation7]   ;;  %s2353_s27 = int_to_ptr.vmem [resolvable:$true] %s2352_s27 }
  0x52   : > { %258 = vmatprep.subr.mxu0 %v205_v9  ;;  %s2727_s21 = sshll.u32 %s2812_s16, 4  ;;  %s2728_s21 = int_to_ptr.vmem [resolvable:$false] %s2727_s21 }
  0x53   : > { %259 = vmatpush1.msra.mxu0 %v204_v10  ;;  %p2730_p10 = scmp.lt.s32.totalorder %s2353_s27, %s2728_s21 }
  0x54   : > { %260 = vmatprep.subr.mxu0 %v203_v11 }
  0x55   : > { %261 = vmatpush1.msra.mxu0 %v202_v12 }
  0x56   : > { %2442 = vmatmul.mubr.msk.f32.vlgmr.msra.gmra.mxu0 %vm226_vm0, %v201_v13  ;;  %2536 = vmatprep.subr.mxu0 %v2797_v0 }
  0x57   : > { %2538 = vmatprep.mubr.msk.f32.mxu0 %vm2806_vm1, %v2797_v0 }
 0x116   : > { %v296_v19 = vpop.f32.mrf.mxu0 }
 0x117   : > { %v2961_v20 = vadd.f32 %v296_v19, %v219_v18 }
 0x118   : > { %v298_v38 = vpop.f32.mrf.mxu0 }
 0x119   : > { %308 = vrot.lane.b32.xlu1 %v2961_v20, %s2798_s17  ;;  %302 = vrot.lane.b32.xlu0 %v2961_v20, %s2799_s22  ;;  %v299_v49 = vadd.f32 %v298_v38, %v223_v37  ;;  %s3246_s17 = scalar_lea.hbm %s3287_s3, %s2494_s10  ;;  %s2339_s22 = scalar_lea.sflag [#allocation4], %s2940_s11 }
 0x11d   : > { %311 = vrot.lane.b32.xlu1 %v2961_v20, %s2800_s23  ;;  %305 = vrot.lane.b32.xlu0 %v2961_v20, %s2801_s25  ;;  %s2729_s25 = scalar_lea.vmem %s2728_s21, 256 }
 0x121   : > { %569 = vrot.lane.b32.xlu1 %v2961_v20, %s2802_s28  ;;  %314 = vrot.lane.b32.xlu0 %v2961_v20, %s2803_s29 }
 0x18b   : > { %v309_v26 = vpop.permute.xlu1 %308  ;;  %v303_v27 = vpop.permute.xlu0 %302 }
 0x18c   : > { %v333_v28 = vcombine.low %v303_v27, %v309_v26  ;;  %v334_v29 = vcombine.high %v303_v27, %v309_v26  ;;  %571 = vrot.lane.b32.xlu0 %v303_v27, %s2802_s28 }
 0x18e   : > { %v341_v39 = vrot.slane %v333_v28, %v2973_v32  ;;  %v348_v40 = vrot.slane %v334_v29, %v2973_v32 }
 0x18f   : > { %v306_v33 = vpop.permute.xlu0 %305  ;;  %v312_v44 = vpop.permute.xlu1 %311 }
 0x190   : > { %v317_v34 = vcombine.low %v2961_v20, %v306_v33  ;;  %v318_v35 = vcombine.high %v2961_v20, %v306_v33  ;;  %575 = vrot.lane.b32.xlu0 %v309_v26, %s2802_s28  ;;  %573 = vrot.lane.b32.xlu1 %v306_v33, %s2802_s28  ;;  %v349_v13 = vcombine.high %v312_v44, %v2797_v0 }
 0x191   : > { %v356_v14 = vrot.slane %v312_v44, %v2973_v32 }
 0x192   : > { %v325_v41 = vrot.slane %v317_v34, %v2973_v32  ;;  %v332_v42 = vrot.slane %v318_v35, %v2973_v32  ;;  %v363_v18 = vrot.slane %v349_v13, %v2973_v32 }
 0x193   : > { %v315_v43 = vpop.permute.xlu0 %314  ;;  %v570_v24 = vpop.permute.xlu1 %569 }
 0x194   : > { %v379_v45 = vcombine.low %v325_v41, %v341_v39  ;;  %v380_v46 = vcombine.high %v325_v41, %v341_v39  ;;  %v395_v47 = vcombine.low %v332_v42, %v348_v40  ;;  %v396_v48 = vcombine.high %v332_v42, %v348_v40  ;;  %579 = vrot.lane.b32.xlu0 %v315_v43, %s2802_s28 }
 0x195   : > { %577 = vrot.lane.b32.xlu1 %v312_v44, %s2802_s28  ;;  %v364_v11 = vcombine.high %v315_v43, %v2797_v0  ;;  %v371_v12 = vrot.slane %v315_v43, %v2973_v32 }
 0x196   : > { %v387_v50 = vrot.slane %v379_v45, %v2978_v36  ;;  %v394_v51 = vrot.slane %v380_v46, %v2978_v36  ;;  %v403_v52 = vrot.slane %v395_v47, %v2978_v36  ;;  %v410_v53 = vrot.slane %v396_v48, %v2978_v36 }
 0x197   : > { %v378_v15 = vrot.slane %v364_v11, %v2973_v32  ;;  %v411_v16 = vcombine.low %v356_v14, %v371_v12  ;;  %v412_v17 = vcombine.high %v356_v14, %v371_v12 }
 0x198   : > { %v2443_v54 = vcombine.low %v387_v50, %v394_v51  ;;  %v2445_v55 = vcombine.high %v387_v50, %v394_v51  ;;  %v2447_v56 = vcombine.low %v403_v52, %v410_v53  ;;  %v2449_v57 = vcombine.high %v403_v52, %v410_v53  ;;  %842 = vrot.lane.b32.xlu0 %v299_v49, %s2803_s29 }
 0x199   : > { %840 = vrot.lane.b32.xlu1 %v299_v49, %s2800_s23  ;;  %v427_v19 = vcombine.low %v363_v18, %v378_v15  ;;  %v419_v21 = vrot.slane %v411_v16, %v2978_v36  ;;  %v426_v22 = vrot.slane %v412_v17, %v2978_v36  ;;  %s2723_s23 = scalar_lea.vmem %s2353_s27, 128 }
 0x19a   : > { %v459_v58 = vrot.slane %v2443_v54, %v2973_v32  ;;  %v475_v59 = vrot.slane %v2445_v55, %v2973_v32  ;;  %v491_v60 = vrot.slane %v2447_v56, %v2973_v32  ;;  %v507_v61 = vrot.slane %v2449_v57, %v2973_v32  ;;  %p2724_p8 = scmp.ne.s32.totalorder %s2353_s27, %s2723_s23  ;;  %p2731_p2 = scmp.lt.s32.totalorder %s2729_s25, %s2723_s23 }
 0x19b   : > { %v435_v25 = vrot.slane %v427_v19, %v2978_v36  ;;  %v2446_v29 = vcombine.high %v419_v21, %v426_v22 }
 0x19c   : > { %846 = vrot.lane.b32.xlu0 %v303_v27, %s2807_s30  ;;  %v515_v62 = vcombine.low %v459_v58, %v475_v59  ;;  %v516_v63 = vcombine.high %v459_v58, %v475_v59  ;;  %v539_v2 = vcombine.low %v491_v60, %v507_v61  ;;  %v540_v3 = vcombine.high %v491_v60, %v507_v61  ;;  %p2725_p11 = pnand %p2724_p8, %p3303_p3  ;;  %p2732_p13 = por %p2731_p2, %p2730_p10 }
 0x19d   : > { %844 = vrot.lane.b32.xlu1 %v2961_v20, %s2807_s30  ;;  %v428_v20 = vcombine.high %v363_v18, %v378_v15  ;;  %v2444_v27 = vcombine.low %v419_v21, %v426_v22  ;;  %v3044_v44 = vrot.slane %v2446_v29, %v2973_v32 }
 0x19e   : > { %v3005_v1 = vrot.slane %v515_v62, %v2978_v36  ;;  %v3008_v4 = vrot.slane %v516_v63, %v2978_v36  ;;  %v3012_v5 = vrot.slane %v539_v2, %v2978_v36  ;;  %v3015_v6 = vrot.slane %v540_v3, %v2978_v36  ;;  %p2726_p7 = pneg %p2725_p11 }
 0x19f   : > { %v3039_v40 = vrot.slane %v2444_v27, %v2973_v32 }
 0x1a0   : > { %850 = vrot.lane.b32.xlu0 %v309_v26, %s2807_s30  ;;  %v563_v7 = vcombine.low %v3005_v1, %v3012_v5  ;;  %v564_v8 = vcombine.high %v3005_v1, %v3012_v5  ;;  %v566_v9 = vcombine.high %v3008_v4, %v3015_v6  ;;  %v565_v10 = vcombine.low %v3008_v4, %v3015_v6  ;;  %p2733_p0 = pnand %p2732_p13, %p2726_p7 }
 0x1a1   : > { %848 = vrot.lane.b32.xlu1 %v306_v33, %s2807_s30  ;;  %v442_v26 = vrot.slane %v428_v20, %v2978_v36 }
 0x1a3   : > { %v2448_v37 = vcombine.low %v435_v25, %v442_v26  ;;  %v2450_v45 = vcombine.high %v435_v25, %v442_v26 }
 0x1a5   : > { %v3049_v53 = vrot.slane %v2448_v37, %v2973_v32  ;;  %v3059_v62 = vrot.slane %v2450_v45, %v2973_v32 }
 0x1fe   : > { %v572_v23 = vpop.permute.xlu0 %571 }
 0x202   : > { %v576_v28 = vpop.permute.xlu0 %575  ;;  %v574_v30 = vpop.permute.xlu1 %573 }
 0x203   : > { %v603_v31 = vcombine.low %v572_v23, %v576_v28  ;;  %v604_v33 = vcombine.high %v572_v23, %v576_v28  ;;  %v587_v34 = vcombine.low %v570_v24, %v574_v30  ;;  %v588_v35 = vcombine.high %v570_v24, %v574_v30 }
 0x205   : > { %v611_v38 = vrot.slane %v603_v31, %v2973_v32  ;;  %v618_v39 = vrot.slane %v604_v33, %v2973_v32  ;;  %v595_v41 = vrot.slane %v587_v34, %v2973_v32  ;;  %v602_v42 = vrot.slane %v588_v35, %v2973_v32 }
 0x206   : > { %v580_v43 = vpop.permute.xlu0 %579 }
 0x207   : > { %v578_v46 = vpop.permute.xlu1 %577  ;;  %v634_v47 = vcombine.high %v580_v43, %v2797_v0  ;;  %v641_v48 = vrot.slane %v580_v43, %v2973_v32  ;;  %v649_v49 = vcombine.low %v595_v41, %v611_v38  ;;  %v650_v50 = vcombine.high %v595_v41, %v611_v38 }
 0x208   : > { %v665_v51 = vcombine.low %v602_v42, %v618_v39  ;;  %v666_v52 = vcombine.high %v602_v42, %v618_v39  ;;  %v619_v54 = vcombine.high %v578_v46, %v2797_v0  ;;  %v626_v55 = vrot.slane %v578_v46, %v2973_v32 }
 0x209   : > { %v648_v56 = vrot.slane %v634_v47, %v2973_v32  ;;  %v657_v57 = vrot.slane %v649_v49, %v2978_v36  ;;  %v664_v58 = vrot.slane %v650_v50, %v2978_v36 }
 0x20a   : > { %v673_v59 = vrot.slane %v665_v51, %v2978_v36  ;;  %v680_v60 = vrot.slane %v666_v52, %v2978_v36  ;;  %v843_v61 = vpop.permute.xlu0 %842  ;;  %v633_v63 = vrot.slane %v619_v54, %v2973_v32  ;;  %v681_v2 = vcombine.low %v626_v55, %v641_v48 }
 0x20b   : > { %v682_v3 = vcombine.high %v626_v55, %v641_v48  ;;  %v841_v11 = vpop.permute.xlu1 %840  ;;  %854 = vrot.lane.b32.xlu0 %v843_v61, %s2807_s30  ;;  %v2451_v12 = vcombine.low %v657_v57, %v664_v58  ;;  %v2453_v13 = vcombine.high %v657_v57, %v664_v58  ;;  %v555_v57 = vcombine.low %v3049_v53, %v3059_v62 }
 0x20c   : > { %v2455_v14 = vcombine.low %v673_v59, %v680_v60  ;;  %v2457_v15 = vcombine.high %v673_v59, %v680_v60  ;;  %852 = vrot.lane.b32.xlu1 %v841_v11, %s2807_s30  ;;  %v689_v16 = vrot.slane %v681_v2, %v2978_v36  ;;  %v697_v18 = vcombine.low %v633_v63, %v648_v56 }
 0x20d   : > { %v696_v17 = vrot.slane %v682_v3, %v2978_v36  ;;  %v698_v19 = vcombine.high %v633_v63, %v648_v56  ;;  %v729_v21 = vrot.slane %v2451_v12, %v2973_v32  ;;  %v745_v22 = vrot.slane %v2453_v13, %v2973_v32 }
 0x20e   : > { %v847_v20 = vpop.permute.xlu0 %846  ;;  %v761_v23 = vrot.slane %v2455_v14, %v2973_v32  ;;  %v777_v24 = vrot.slane %v2457_v15, %v2973_v32  ;;  %v705_v25 = vrot.slane %v697_v18, %v2978_v36  ;;  %v531_v3 = vcombine.low %v3039_v40, %v3044_v44 }
 0x20f   : > { %v712_v26 = vrot.slane %v698_v19, %v2978_v36  ;;  %v2452_v27 = vcombine.low %v689_v16, %v696_v17  ;;  %v2454_v28 = vcombine.high %v689_v16, %v696_v17  ;;  %v845_v29 = vpop.permute.xlu1 %844  ;;  %v785_v30 = vcombine.low %v729_v21, %v745_v22 }
 0x210   : > { %v786_v31 = vcombine.high %v729_v21, %v745_v22  ;;  %v809_v33 = vcombine.low %v761_v23, %v777_v24  ;;  %v810_v34 = vcombine.high %v761_v23, %v777_v24  ;;  %v562_v44 = vrot.slane %v555_v57, %v2978_v36 }
 0x211   : > { %v736_v35 = vrot.slane %v2452_v27, %v2973_v32  ;;  %v752_v37 = vrot.slane %v2454_v28, %v2973_v32  ;;  %v2456_v38 = vcombine.low %v705_v25, %v712_v26  ;;  %v2458_v39 = vcombine.high %v705_v25, %v712_v26 }
 0x212   : > { %v851_v41 = vpop.permute.xlu0 %850  ;;  %v793_v42 = vrot.slane %v785_v30, %v2978_v36  ;;  %v817_v43 = vrot.slane %v809_v33, %v2978_v36  ;;  %v800_v45 = vrot.slane %v786_v31, %v2978_v36  ;;  %v824_v46 = vrot.slane %v810_v34, %v2978_v36 }
 0x213   : > { %v768_v47 = vrot.slane %v2456_v38, %v2973_v32  ;;  %v784_v48 = vrot.slane %v2458_v39, %v2973_v32  ;;  %v801_v49 = vcombine.low %v736_v35, %v752_v37  ;;  %v849_v50 = vpop.permute.xlu1 %848  ;;  %v878_v51 = vcombine.low %v847_v20, %v851_v41 }
 0x214   : > { %v862_v52 = vcombine.low %v845_v29, %v849_v50  ;;  %v863_v54 = vcombine.high %v845_v29, %v849_v50  ;;  %v879_v55 = vcombine.high %v847_v20, %v851_v41  ;;  %v833_v56 = vcombine.low %v793_v42, %v817_v43 }
 0x215   : > { %v825_v58 = vcombine.low %v768_v47, %v784_v48  ;;  %v886_v59 = vrot.slane %v878_v51, %v2973_v32  ;;  %v836_v2 = vcombine.high %v800_v45, %v824_v46  ;;  %v808_v11 = vrot.slane %v801_v49, %v2978_v36 }
 0x216   : > { %v870_v60 = vrot.slane %v862_v52, %v2973_v32  ;;  %v877_v61 = vrot.slane %v863_v54, %v2973_v32  ;;  %v893_v63 = vrot.slane %v879_v55, %v2973_v32  ;;  %2522 = vmatpush3.xpose.msk.msra.mxu1 %vm1114_vm2, %v833_v56  ;;  %v834_v12 = vcombine.high %v793_v42, %v817_v43 }
 0x217   : > { %2526 = vmatprep.subr.mxu1 %v2797_v0  ;;  %v832_v53 = vrot.slane %v825_v58, %v2978_v36  ;;  %2537 = vmatpush3.xpose.msk.msra.mxu0 %vm1114_vm2, %v836_v2  ;;  %v835_v24 = vcombine.low %v800_v45, %v824_v46 }
 0x218   : > { %v924_v62 = vcombine.low %v870_v60, %v886_v59  ;;  %v925_v13 = vcombine.high %v870_v60, %v886_v59  ;;  %v940_v14 = vcombine.low %v877_v61, %v893_v63  ;;  %v941_v15 = vcombine.high %v877_v61, %v893_v63  ;;  %2546 = vmatprep.subr.mxu0 %v2797_v0 }
 0x219   : > { %2524 = vmatmul.mubr.msk.f32.vlgmr.msra.gmra.mxu1 %vm1114_vm2, %v563_v7  ;;  %v838_v40 = vcombine.high %v808_v11, %v832_v53  ;;  %v538_v7 = vrot.slane %v531_v3, %v2978_v36  ;;  %v837_v29 = vcombine.low %v808_v11, %v832_v53 }
 0x21a   : > { %v932_v16 = vrot.slane %v924_v62, %v2978_v36  ;;  %v939_v17 = vrot.slane %v925_v13, %v2978_v36  ;;  %v948_v18 = vrot.slane %v940_v14, %v2978_v36  ;;  %v955_v19 = vrot.slane %v941_v15, %v2978_v36  ;;  %2527 = vmatpush3.xpose.msk.msra.mxu1 %vm1114_vm2, %v834_v12 }
 0x21b   : > { %2539 = vmatmul.mubr.msk.f32.vlgmr.msra.gmra.mxu0 %vm1114_vm2, %v566_v9  ;;  %2528 = vmatprep.mubr.msk.f32.mxu1 %vm2806_vm1, %v2797_v0  ;;  %v568_v9 = vcombine.high %v538_v7, %v562_v44  ;;  %v567_v37 = vcombine.low %v538_v7, %v562_v44 }
 0x21c   : > { %v2459_v20 = vcombine.low %v932_v16, %v939_v17  ;;  %v2461_v21 = vcombine.high %v932_v16, %v939_v17  ;;  %v2463_v22 = vcombine.low %v948_v18, %v955_v19  ;;  %v2465_v23 = vcombine.high %v948_v18, %v955_v19  ;;  %2547 = vmatpush3.xpose.msk.msra.mxu0 %vm1114_vm2, %v838_v40 }
 0x21d   : > { %2548 = vmatprep.mubr.msk.f32.mxu0 %vm2806_vm1, %v2797_v0  ;;  %2529 = vmatmul.mubr.msk.f32.vlgmr.msra.gmra.mxu1 %vm1114_vm2, %v564_v8 }
 0x21e   : > { %v1004_v25 = vrot.slane %v2459_v20, %v2973_v32  ;;  %v1020_v26 = vrot.slane %v2461_v21, %v2973_v32  ;;  %v1036_v27 = vrot.slane %v2463_v22, %v2973_v32  ;;  %v1052_v28 = vrot.slane %v2465_v23, %v2973_v32  ;;  %2531 = vmatprep.subr.mxu1 %v2797_v0 }
 0x21f   : > { %2549 = vmatmul.mubr.msk.f32.vlgmr.msra.gmra.mxu0 %vm1114_vm2, %v568_v9  ;;  %2532 = vmatpush3.xpose.msk.msra.mxu1 %vm1114_vm2, %v835_v24 }
 0x220   : > { %2533 = vmatprep.mubr.msk.f32.mxu1 %vm2806_vm1, %v2797_v0  ;;  %2541 = vmatprep.subr.mxu1 %v2797_v0  ;;  %v1060_v1 = vcombine.low %v1004_v25, %v1020_v26  ;;  %v1084_v5 = vcombine.low %v1036_v27, %v1052_v28  ;;  %v1061_v8 = vcombine.high %v1004_v25, %v1020_v26 }
 0x221   : > { %2556 = vmatprep.subr.mxu0 %v2797_v0  ;;  %2558 = vmatprep.mubr.msk.f32.mxu0 %vm2806_vm1, %v2797_v0  ;;  %v1085_v30 = vcombine.high %v1036_v27, %v1052_v28 }
 0x222   : > { %2534 = vmatmul.mubr.msk.f32.vlgmr.msra.gmra.mxu1 %vm1114_vm2, %v565_v10  ;;  %v1068_v31 = vrot.slane %v1060_v1, %v2978_v36  ;;  %v1092_v33 = vrot.slane %v1084_v5, %v2978_v36  ;;  %v3138_v34 = vrot.slane %v1061_v8, %v2978_v36 }
 0x223   : > { %2542 = vmatpush3.xpose.msk.msra.mxu1 %vm1114_vm2, %v837_v29  ;;  %2543 = vmatprep.mubr.msk.f32.mxu1 %vm2806_vm1, %v2797_v0  ;;  %v3144_v35 = vrot.slane %v1085_v30, %v2978_v36 }
 0x224   : > { %2551 = vmatprep.subr.mxu1 %v2797_v0  ;;  %v1108_v4 = vcombine.low %v1068_v31, %v1092_v33  ;;  %v1109_v6 = vcombine.high %v1068_v31, %v1092_v33 }
 0x225   : > { %v1110_v10 = vcombine.low %v3138_v34, %v3144_v35  ;;  %v1111_v38 = vcombine.high %v3138_v34, %v3144_v35 }
 0x226   : > { %2544 = vmatmul.mubr.msk.f32.vlgmr.msra.gmra.mxu1 %vm1114_vm2, %v567_v37  ;;  %2557 = vmatpush3.msra.mxu0 %v1109_v6 }
 0x227   : > { %2552 = vmatpush3.msra.mxu1 %v1108_v4  ;;  %2553 = vmatprep.mubr.msk.f32.mxu1 %vm2806_vm1, %v2797_v0 }
 0x228   : > { %2561 = vmatprep.subr.mxu1 %v2797_v0  ;;  %2566 = vmatprep.subr.mxu0 %v2797_v0 }
 0x27d   : > { %v855_v7 = vpop.permute.xlu0 %854 }
 0x27e   : > { %v853_v19 = vpop.permute.xlu1 %852  ;;  %v909_v22 = vcombine.high %v855_v7, %v2797_v0  ;;  %v916_v31 = vrot.slane %v855_v7, %v2973_v32 }
 0x27f   : > { %v894_v21 = vcombine.high %v853_v19, %v2797_v0  ;;  %v901_v30 = vrot.slane %v853_v19, %v2973_v32 }
 0x280   : > { %v923_v1 = vrot.slane %v909_v22, %v2973_v32 }
 0x281   : > { %v908_v28 = vrot.slane %v894_v21, %v2973_v32 }
 0x283   : > { %v972_v6 = vcombine.low %v908_v28, %v923_v1 }
 0x2d9   : > { %v1187_v39 = vpop.f32.mrf.mxu1 }
 0x2da   : > { %v1571_v55 = vsel %vm1114_vm2, %v1187_v39, -inf }
 0x2db   : > { %v1415_v41 = vpop.f32.mrf.mxu0  ;;  %v2525_v42 = vpop.f32.mrf.mxu1 }
 0x2dc   : > { %v1574_v61 = vsel %vm1114_vm2, %v1415_v41, -inf }
 0x2dd   : > { %v2540_v43 = vpop.f32.mrf.mxu0  ;;  %v1263_v45 = vpop.f32.mrf.mxu1 }
 0x2de   : > { %v1572_v51 = vsel %vm1114_vm2, %v1263_v45, -inf  ;;  %v956_v43 = vcombine.low %v901_v30, %v916_v31 }
 0x2df   : > { %v1567_v46 = vpop.f32.mrf.mxu0  ;;  %v2530_v47 = vpop.f32.mrf.mxu1 }
 0x2e0   : > { %v1577_v52 = vsel %vm1114_vm2, %v1567_v46, -inf }
 0x2e1   : > { %v2550_v48 = vpop.f32.mrf.mxu0  ;;  %v1578_v58 = vmax.f32 %v1572_v51, %v1577_v52 }
 0x2e2   : > { %v1339_v49 = vpop.f32.mrf.mxu1  ;;  %v980_v48 = vrot.slane %v972_v6, %v2978_v36 }
 0x2e3   : > { %v1573_v56 = vsel %vm1114_vm2, %v1339_v49, -inf }
 0x2e4   : > { %v2535_v50 = vpop.f32.mrf.mxu1  ;;  %v1580_v63 = vmax.f32 %v1573_v56, %v1574_v61 }
 0x2e5   : > { %v964_v50 = vrot.slane %v956_v43, %v2978_v36 }
 0x2e6   : > { %v1491_v54 = vpop.f32.mrf.mxu1 }
 0x2e7   : > { %v1575_v57 = vsel %vm1114_vm2, %v1491_v54, -inf }
 0x2e8   : > { %v1576_v59 = vmax.f32 %v1571_v55, %v1575_v57  ;;  %v2545_v60 = vpop.f32.mrf.mxu1 }
 0x2ea   : > { %v1579_v2 = vmax.f32 %v1576_v59, %v1578_v58 }
 0x2ec   : > { %v1581_v3 = vmax.f32 %v1579_v2, %v1580_v63 }
 0x2ee   : > { %v1582_v11 = vsub.f32 %v1187_v39, %v1581_v3  ;;  %v1583_v12 = vsub.f32 %v1263_v45, %v1581_v3  ;;  %v1584_v53 = vsub.f32 %v1339_v49, %v1581_v3  ;;  %v1585_v62 = vsub.f32 %v1415_v41, %v1581_v3 }
 0x2ef   : > { %v1586_v13 = vsub.f32 %v1491_v54, %v1581_v3  ;;  %v1587_v44 = vsub.f32 %v1567_v46, %v1581_v3  ;;  %v973_v39 = vcombine.high %v908_v28, %v923_v1  ;;  %v957_v45 = vcombine.high %v901_v30, %v916_v31 }
 0x2f0   : > { %v1588_v14 = vmul.f32 1.442695, %v1582_v11  ;;  %v1590_v15 = vmul.f32 1.442695, %v1583_v12  ;;  %v1592_v40 = vmul.f32 1.442695, %v1584_v53 }
 0x2f1   : > { %v1594_v16 = vmul.f32 1.442695, %v1585_v62  ;;  %v1596_v17 = vmul.f32 1.442695, %v1586_v13  ;;  %v1598_v18 = vmul.f32 1.442695, %v1587_v44  ;;  %v987_v49 = vrot.slane %v973_v39, %v2978_v36 }
 0x2f2   : > { %2655 = vpow2.f32 %v1588_v14  ;;  %v971_v51 = vrot.slane %v957_v45, %v2978_v36 }
 0x2f3   : > { %2657 = vpow2.f32 %v1590_v15  ;;  %v2464_v52 = vcombine.low %v980_v48, %v987_v49  ;;  %v2466_v54 = vcombine.high %v980_v48, %v987_v49 }
 0x2f4   : > { %2659 = vpow2.f32 %v1592_v40  ;;  %v2460_v55 = vcombine.low %v964_v50, %v971_v51  ;;  %v2462_v56 = vcombine.high %v964_v50, %v971_v51 }
 0x2f5   : > { %2661 = vpow2.f32 %v1594_v16  ;;  %v1043_v57 = vrot.slane %v2464_v52, %v2973_v32  ;;  %v1059_v58 = vrot.slane %v2466_v54, %v2973_v32 }
 0x2f6   : > { %2663 = vpow2.f32 %v1596_v17  ;;  %v1011_v59 = vrot.slane %v2460_v55, %v2973_v32  ;;  %v1027_v60 = vrot.slane %v2462_v56, %v2973_v32 }
 0x2f7   : > { %2665 = vpow2.f32 %v1598_v18  ;;  %v1100_v61 = vcombine.low %v1043_v57, %v1059_v58 }
 0x2f8   : > { %v1076_v2 = vcombine.low %v1011_v59, %v1027_v60 }
 0x2f9   : > { %v1107_v12 = vrot.slane %v1100_v61, %v2978_v36 }
 0x2fa   : > { %v1083_v53 = vrot.slane %v1076_v2, %v2978_v36 }
 0x2fc   : > { %v1112_v14 = vcombine.low %v1083_v53, %v1107_v12 }
 0x2ff   : > { %v2656_v20 = vpop.eup %2655 }
 0x300   : > { %v2658_v23 = vpop.eup %2657  ;;  %v1600_v9 = vsel %vm1114_vm2, %v2656_v20, 0.0 }
 0x301   : > { %v2660_v24 = vpop.eup %2659  ;;  %v1601_v25 = vsel %vm1114_vm2, %v2658_v23, 0.0 }
 0x302   : > { %v2662_v26 = vpop.eup %2661  ;;  %v1602_v27 = vadd.f32 %v1601_v25, %v1600_v9  ;;  %v1603_v5 = vsel %vm1114_vm2, %v2660_v24, 0.0 }
 0x303   : > { %v2664_v8 = vpop.eup %2663  ;;  %v1605_v33 = vsel %vm1114_vm2, %v2662_v26, 0.0 }
 0x304   : > { %v1604_v29 = vadd.f32 %v1603_v5, %v1602_v27  ;;  %v2666_v37 = vpop.eup %2665  ;;  %v1607_v41 = vsel %vm1114_vm2, %v2664_v8, 0.0 }
 0x305   : > { %v1609_v46 = vsel %vm1114_vm2, %v2666_v37, 0.0 }
 0x306   : > { %v1606_v4 = vadd.f32 %v1605_v33, %v1604_v29 }
 0x308   : > { %v1608_v42 = vadd.f32 %v1607_v41, %v1606_v4 }
 0x30a   : > { %v1610_v47 = vadd.f32 %v1609_v46, %v1608_v42 }
 0x30c   : > { %2667 = vrcp.f32 %v1610_v47 }
 0x319   : > { %v2668_v63 = vpop.eup %2667 }
 0x31a   : > { %v1612_v3 = vmul.f32 %v2668_v63, %v2656_v20  ;;  %v1613_v11 = vmul.f32 %v2668_v63, %v2658_v23  ;;  %v1614_v62 = vmul.f32 %v2668_v63, %v2660_v24  ;;  %v1615_v13 = vmul.f32 %v2668_v63, %v2662_v26 }
 0x31b   : > { %v1616_v34 = vmul.f32 %v2668_v63, %v2664_v8  ;;  %v1617_v35 = vmul.f32 %v2668_v63, %v2666_v37 }
 0x31c   : > { %2554 = vmatmul.mubr.msk.f32.vlgmr.msra.gmra.mxu1 %vm1114_vm2, %v1612_v3  ;;  %2559 = vmatmul.mubr.msk.f32.vlgmr.msra.gmra.mxu0 %vm1114_vm2, %v1613_v11 }
 0x31d   : > { %2562 = vmatpush3.msra.mxu1 %v1110_v10  ;;  %2567 = vmatpush3.msra.mxu0 %v1111_v38  ;;  %v1113_v10 = vcombine.high %v1083_v53, %v1107_v12 }
 0x31e   : > { %2563 = vmatprep.mubr.msk.f32.mxu1 %vm2806_vm1, %v2797_v0  ;;  %2568 = vmatprep.mubr.msk.f32.mxu0 %vm2806_vm1, %v2797_v0 }
 0x31f   : > { %2571 = vmatprep.subr.mxu1 %v2797_v0  ;;  %2576 = vmatprep.subr.mxu0 %v2797_v0 }
 0x320   : > { %2564 = vmatmul.mubr.msk.f32.vlgmr.msra.gmra.mxu1 %vm1114_vm2, %v1614_v62  ;;  %2569 = vmatmul.mubr.msk.f32.vlgmr.msra.gmra.mxu0 %vm1114_vm2, %v1615_v13 }
 0x321   : > { %2572 = vmatpush3.msra.mxu1 %v1112_v14  ;;  %2577 = vmatpush3.msra.mxu0 %v1113_v10 }
 0x322   : > { %2573 = vmatprep.mubr.msk.f32.mxu1 %vm2806_vm1, %v2797_v0  ;;  %2578 = vmatprep.mubr.msk.f32.mxu0 %vm2806_vm1, %v2797_v0 }
 0x324   : > { %2574 = vmatmul.mubr.msk.f32.vlgmr.msra.gmra.mxu1 %vm1114_vm2, %v1616_v34  ;;  %2579 = vmatmul.mubr.msk.f32.vlgmr.msra.gmra.mxu0 %vm1114_vm2, %v1617_v35 }
 0x3dc   : > { %v1687_v38 = vpop.f32.mrf.mxu1  ;;  %v1760_v15 = vpop.f32.mrf.mxu0 }
 0x3de   : > { %v2555_v40 = vpop.f32.mrf.mxu1  ;;  %v2560_v44 = vpop.f32.mrf.mxu0 }
 0x3e0   : > { %v1833_v16 = vpop.f32.mrf.mxu1  ;;  %v1906_v17 = vpop.f32.mrf.mxu0 }
 0x3e1   : > { %v2056_v18 = vcombine.low %v1687_v38, %v1833_v16  ;;  %v2057_v19 = vcombine.high %v1687_v38, %v1833_v16  ;;  %v2072_v7 = vcombine.low %v1760_v15, %v1906_v17  ;;  %v2073_v20 = vcombine.high %v1760_v15, %v1906_v17 }
 0x3e2   : > { %v2565_v21 = vpop.f32.mrf.mxu1  ;;  %v2570_v22 = vpop.f32.mrf.mxu0 }
 0x3e3   : > { %v2064_v23 = vrot.slane %v2056_v18, %v2973_v32  ;;  %v2071_v9 = vrot.slane %v2057_v19, %v2973_v32  ;;  %v2080_v24 = vrot.slane %v2072_v7, %v2973_v32  ;;  %v2087_v25 = vrot.slane %v2073_v20, %v2973_v32 }
 0x3e4   : > { %v1979_v26 = vpop.f32.mrf.mxu1  ;;  %v2052_v27 = vpop.f32.mrf.mxu0 }
 0x3e5   : > { %v2118_v28 = vcombine.low %v2064_v23, %v2080_v24  ;;  %v2119_v1 = vcombine.high %v2064_v23, %v2080_v24  ;;  %v2134_v5 = vcombine.low %v2071_v9, %v2087_v25  ;;  %v2135_v8 = vcombine.high %v2071_v9, %v2087_v25 }
 0x3e6   : > { %v2088_v29 = vcombine.high %v1979_v26, %v2797_v0  ;;  %v2095_v30 = vrot.slane %v1979_v26, %v2973_v32  ;;  %v2103_v31 = vcombine.high %v2052_v27, %v2797_v0  ;;  %v2110_v33 = vrot.slane %v2052_v27, %v2973_v32  ;;  %v2575_v37 = vpop.f32.mrf.mxu1  ;;  %v2580_v4 = vpop.f32.mrf.mxu0 }
 0x3e7   : > { %v2126_v6 = vrot.slane %v2118_v28, %v2978_v36  ;;  %v2133_v39 = vrot.slane %v2119_v1, %v2978_v36  ;;  %v2142_v41 = vrot.slane %v2134_v5, %v2978_v36  ;;  %v2149_v42 = vrot.slane %v2135_v8, %v2978_v36 }
 0x3e8   : > { %v2102_v43 = vrot.slane %v2088_v29, %v2973_v32  ;;  %v2117_v45 = vrot.slane %v2103_v31, %v2973_v32  ;;  %v2150_v46 = vcombine.low %v2095_v30, %v2110_v33  ;;  %v2151_v47 = vcombine.high %v2095_v30, %v2110_v33 }
 0x3e9   : > { %v2485_v48 = vcombine.low %v2126_v6, %v2133_v39  ;;  %v2487_v0 = vcombine.high %v2126_v6, %v2133_v39  ;;  %v2489_v49 = vcombine.low %v2142_v41, %v2149_v42  ;;  %v2491_v50 = vcombine.high %v2142_v41, %v2149_v42 }
 0x3ea   : > { %v2158_v51 = vrot.slane %v2150_v46, %v2978_v36  ;;  %v2165_v52 = vrot.slane %v2151_v47, %v2978_v36  ;;  %v2166_v54 = vcombine.low %v2102_v43, %v2117_v45  ;;  %v2167_v55 = vcombine.high %v2102_v43, %v2117_v45 }
 0x3eb   : > { %v2198_v56 = vrot.slane %v2485_v48, %v2973_v32  ;;  %v2214_v57 = vrot.slane %v2487_v0, %v2973_v32  ;;  %v2230_v58 = vrot.slane %v2489_v49, %v2973_v32  ;;  %v2246_v59 = vrot.slane %v2491_v50, %v2973_v32 }
 0x3ec   : > { %v2174_v60 = vrot.slane %v2166_v54, %v2978_v36  ;;  %v2181_v61 = vrot.slane %v2167_v55, %v2978_v36  ;;  %v2486_v63 = vcombine.low %v2158_v51, %v2165_v52  ;;  %v2488_v2 = vcombine.high %v2158_v51, %v2165_v52 }
 0x3ed   : > { %v2255_v3 = vcombine.high %v2198_v56, %v2214_v57  ;;  %v2279_v11 = vcombine.high %v2230_v58, %v2246_v59  ;;  %v2254_v12 = vcombine.low %v2198_v56, %v2214_v57  ;;  %v2278_v53 = vcombine.low %v2230_v58, %v2246_v59 }
 0x3ee   : > { %v2205_v62 = vrot.slane %v2486_v63, %v2973_v32  ;;  %v2221_v13 = vrot.slane %v2488_v2, %v2973_v32  ;;  %v2490_v14 = vcombine.low %v2174_v60, %v2181_v61  ;;  %v2492_v10 = vcombine.high %v2174_v60, %v2181_v61 }
 0x3ef   : > { %v2269_v34 = vrot.slane %v2255_v3, %v2978_v36  ;;  %v2293_v35 = vrot.slane %v2279_v11, %v2978_v36  ;;  %v2262_v38 = vrot.slane %v2254_v12, %v2978_v36  ;;  %v2286_v15 = vrot.slane %v2278_v53, %v2978_v36 }
 0x3f0   : > { %v2237_v40 = vrot.slane %v2490_v14, %v2973_v32  ;;  %v2253_v44 = vrot.slane %v2492_v10, %v2973_v32  ;;  %v2270_v16 = vcombine.low %v2205_v62, %v2221_v13 }
 0x3f1   : > { %v2304_v17 = vcombine.low %v2269_v34, %v2293_v35  ;;  %v2303_v18 = vcombine.high %v2262_v38, %v2286_v15  ;;  %v2302_v19 = vcombine.low %v2262_v38, %v2286_v15  ;;  %v2305_v22 = vcombine.high %v2269_v34, %v2293_v35 }
 0x3f2   : > { %v2294_v7 = vcombine.low %v2237_v40, %v2253_v44  ;;  %v2277_v20 = vrot.slane %v2270_v16, %v2978_v36 }
 0x3f3   : > { %2313 = vrot.lane.b32.xlu0 %v2304_v17, %s2808_s4  ;;  %2309 = vrot.lane.b32.xlu1 %v2303_v18, %s2809_s8 }
 0x3f4   : > { %v2301_v21 = vrot.slane %v2294_v7, %v2978_v36 }
 0x3f6   : > { %v2306_v23 = vcombine.low %v2277_v20, %v2301_v21  ;;  %v2307_v32 = vcombine.high %v2277_v20, %v2301_v21 }
 0x3f7   : > { %2317 = vrot.lane.b32.xlu1 %v2305_v22, %s2810_s7 }
 0x3f8   : > { %2321 = vrot.lane.b32.xlu0 %v2306_v23, %s2807_s30 }
 0x3fb   : > { %2325 = vrot.lane.b32.xlu1 %v2307_v32, %s2811_s9 }
 0x465   : > { %v2310_v9 = vpop.permute.xlu1 %2309  ;;  %v2314_v24 = vpop.permute.xlu0 %2313 }
 0x466   : > { %v2328_v25 = vsel %vm1114_vm2, %v2302_v19, %v2310_v9 }
 0x467   : > { %v2330_v26 = vsel %vm2329_vm3, %v2328_v25, %v2314_v24 }
 0x469   : > { %v2318_v36 = vpop.permute.xlu1 %2317 }
 0x46a   : > { %v2332_v27 = vsel %vm2331_vm4, %v2330_v26, %v2318_v36  ;;  %v2322_v28 = vpop.permute.xlu0 %2321 }
 0x46b   : > { %v2334_v1 = vsel %vm2333_vm5, %v2332_v27, %v2322_v28 }
 0x46d   : > { %v2326_v5 = vpop.permute.xlu1 %2325 }
 0x46e   : > { %v2336_v8 = vsel %vm2335_vm6, %v2334_v1, %v2326_v5 }
 0x46f   : > { %2337 = vst.msk [vmem:[%s200_s26] sm:$0xff] %vm226_vm0, %v2336_v8 }
 0x470   : > { %2736 = shalt.err (!%p2733_p0)
}
 0x471   : > { %s2737_s28 = scalar_lea.hbm %s3246_s17, 128  ;;  %s2741_s30 = scalar_lea.hbm %s3287_s3, 256 }
 0x472   : > { %p2738_p5 = scmp.ne.s32.totalorder %s3246_s17, %s2737_s28  ;;  %p2742_p1 = scmp.lt.s32.totalorder %s3246_s17, %s3287_s3 }
 0x473   : > { %p2743_p4 = scmp.lt.s32.totalorder %s2741_s30, %s2737_s28 }
 0x474   : > { %p2739_p9 = pnand %p2738_p5, %p3303_p3 }
 0x475   : > { %p2744_p6 = por %p2743_p4, %p2742_p1 }
 0x476   : > { %p2740_p12 = pneg %p2739_p9 }
 0x478   : > { %p2745_p8 = pnand %p2744_p6, %p2740_p12 }
 0x47a   : > { %2748 = shalt.err (!%p2745_p8)
}
 0x47b   : > { %2587 = dma.vmem_to_hbm [thread:$0]  (%p3303_p3), %s2353_s27, 128, %s3246_s17, %s2339_s22  }
 0x47c PF: > { %s2364_s7 = sand.u32 1, %s2779_s12   ;;  %p3304_p11 = scmp.ne.s32.totalorder %s3293_s19, 0 }
 0x47d   : > { %p3305_p7 = scmp.ge.s32.totalorder %s2791_s15, 2  ;;  %s2365_s9 = scalar_lea.sflag [#allocation4], %s2364_s7 }
 0x47f   : > { %p2598_p10 = pnand %p3305_p7, %p3304_p11 }
 0x481   : > { %p2599_p2 = pneg %p2598_p10 }
 0x483   : > { %2774 = dma.done.wait (%p2599_p2), %s2365_s9, 128  }
 0x484   : > { %2776 = vsyncadd (%p2599_p2), %s2365_s9, 4294967168  ;;  %p17_p13 = scmp.ge.s32.totalorder %s2887_s24, 4   ;;  %s3306_s12 = smov %s2783_s13 }
 0x485   : > { %s3307_s13 = smov %s2787_s14  ;;  %s3308_s14 = smov %s2904_s5 }
 0x486   : > { %s3309_s15 = smov %s2887_s24  ;;  %19 = sbr.rel (!%p17_p13) target bundleno = 6 (0x6), region = 81 }
 0x48b   :  { %2370 = vsyncpa [#allocation3], 1 }
 0x48c   :  { %2372 = vsyncpa [#allocation3 + $0x1], 1 }
 0x48d   :  { %2373 = vsyncpa [#allocation6], 1 }
 0x48e   :  { %2374 = vsyncpa [#allocation4], 1 }
 0x48f   :  { %2376 = vsyncpa [#allocation4 + $0x1], 1 }

</bundles_post_ra>
